<compile_context>
chip_gen: v7x
topology: tpu7x:2x2x1
jax: 0.10.0
libtpu: 0.0.40
codegen_flags: <defaults>
</compile_context>

<pallas_src>
import functools
import math

import jax
import jax.numpy as jnp
from jax.experimental import pallas as pl
from jax.experimental.pallas import tpu as pltpu


def _round_up(n, m):
    return ((n + m - 1) // m) * m


def _embedding_kernel(idx_ref, table_ref, o_ref, *, scale):
    # idx_ref: (TR, 1) int32   table_ref: (V, D) f32   o_ref: (TR, D) f32
    tr = o_ref.shape[0]
    v = table_ref.shape[0]
    # One-hot gather on the MXU: lane iota over the vocab axis compared against
    # the token ids (broadcast over lanes).
    onehot = (jax.lax.broadcasted_iota(jnp.int32, (tr, v), 1)
              == idx_ref[...]).astype(table_ref.dtype)
    gathered = jnp.dot(onehot, table_ref[...],
                       preferred_element_type=jnp.float32)
    o_ref[...] = (gathered * scale).astype(o_ref.dtype)


def embeddings_forward(idx, table, *, block_rows=256):
    """Pallas equivalent of `Embeddings.forward`:  table[idx] * sqrt(d_model).

    Args:
      idx:   integer token indices, any leading shape (e.g. (batch, n_qubits+1)).
      table: (vocab, d_model) float32 embedding matrix (PyTorch `lut.weight`).
    Returns:
      float32 array of shape idx.shape + (d_model,).
    """
    vocab, d_model = table.shape
    lead_shape = idx.shape
    rows = 1
    for s in lead_shape:
        rows *= int(s)

    scale = float(math.sqrt(d_model))

    idx_flat = idx.reshape(rows).astype(jnp.int32)

    # Row tile: multiple of 8 sublanes, capped at block_rows; pad rows so the
    # grid divides evenly (pad ids are 0 -> valid row, result sliced off).
    tr = min(block_rows, _round_up(rows, 8))
    rows_pad = _round_up(rows, tr)
    if rows_pad != rows:
        idx_flat = jnp.pad(idx_flat, (0, rows_pad - rows))
    idx2d = idx_flat.reshape(rows_pad, 1)

    grid = (rows_pad // tr,)

    flops = 2 * rows_pad * vocab * d_model
    bytes_accessed = (rows_pad * 4                 # idx
                      + vocab * d_model * 4        # table (read once)
                      + rows_pad * d_model * 4)    # output

    # idx + output tiles are double-buffered; table may also get 2 buffers.
    vmem_bytes = 4 * (2 * tr * 1 + 2 * tr * d_model + 2 * vocab * d_model)
    vmem_limit = max(16 * 1024 * 1024, vmem_bytes + 4 * 1024 * 1024)

    out_flat = pl.pallas_call(
        functools.partial(_embedding_kernel, scale=scale),
        out_shape=jax.ShapeDtypeStruct((rows_pad, d_model), jnp.float32),
        grid=grid,
        in_specs=[
            # token ids: tiled along the row grid axis
            pl.BlockSpec((tr, 1), lambda i: (i, 0)),
            # embedding table: pinned resident in VMEM across all grid steps
            pl.BlockSpec((vocab, d_model), lambda i: (0, 0)),
        ],
        out_specs=pl.BlockSpec((tr, d_model), lambda i: (i, 0)),
        compiler_params=pltpu.CompilerParams(
            dimension_semantics=("parallel",),
            vmem_limit_bytes=vmem_limit),
        cost_estimate=pl.CostEstimate(
            flops=flops, transcendentals=0, bytes_accessed=bytes_accessed),
    )(idx2d, table)

    return out_flat[:rows].reshape(*lead_shape, d_model)


if __name__ == "__main__":
    # Shapes consistent with the module: idx = (batch_size, n_qubits+1).
    batch, seq, vocab, d_model = 2, 8, 8, 32

    key = jax.random.PRNGKey(0)
    kid, ktab = jax.random.split(key)

    idx = jax.random.randint(kid, (batch, seq), 0, vocab, dtype=jnp.int32)
    table = jax.random.normal(ktab, (vocab, d_model), dtype=jnp.float32)

    out = embeddings_forward(idx, table)
    jax.block_until_ready(out)

    # Pure-JAX reference of the PyTorch forward.
    ref = table[idx] * math.sqrt(d_model)
    assert out.shape == (batch, seq, d_model)
    assert jnp.allclose(out, ref, atol=1e-5, rtol=1e-5)

    print("KERNEL_OK")
</pallas_src>

<mosaic_0001>
module attributes {stable_mosaic.version = 11 : i64} {
  func.func @_embedding_kernel(%arg0: i32, %arg1: memref<16x1xi32, #tpu.memory_space<vmem>>, %arg2: memref<8x32xf32, #tpu.memory_space<vmem>>, %arg3: memref<16x32xf32, #tpu.memory_space<vmem>>) attributes {dimension_semantics = [#tpu.dimension_semantics<parallel>], iteration_bounds = array<i64: 1>, scalar_prefetch = 0 : i64, scratch_operands = 0 : i64, tpu.core_type = #tpu.core_type<tc>, window_params = [{transform_indices = @transform_0, window_bounds = array<i64: 16, 1>}, {pipeline_mode = #tpu.pipeline_mode<synchronous>, transform_indices = @transform_1, window_bounds = array<i64: 8, 32>}, {transform_indices = @transform_2, window_bounds = array<i64: 16, 32>}]} {
    %0 = tpu.iota {dimensions = array<i32: 1>} : vector<16x8xi32>
    %c0 = arith.constant 0 : index
    %c0_0 = arith.constant 0 : index
    %1 = vector.load %arg1[%c0, %c0_0] : memref<16x1xi32, #tpu.memory_space<vmem>>, vector<16x1xi32>
    %2 = vector.broadcast %1 : vector<16x1xi32> to vector<16x8xi32>
    %3 = arith.cmpi eq, %0, %2 : vector<16x8xi32>
    %4 = arith.extui %3 : vector<16x8xi1> to vector<16x8xi32>
    %5 = arith.sitofp %4 : vector<16x8xi32> to vector<16x8xf32>
    %c0_1 = arith.constant 0 : index
    %c0_2 = arith.constant 0 : index
    %6 = vector.load %arg2[%c0_1, %c0_2] : memref<8x32xf32, #tpu.memory_space<vmem>>, vector<8x32xf32>
    %cst = arith.constant dense<0.000000e+00> : vector<16x32xf32>
    %7 = tpu.matmul %5, %6, %cst {dimension_numbers = #tpu.dot_dimension_numbers<[1], [0], [0], [1], [0, 0, 1, 1], [], []>} : vector<16x8xf32>, vector<8x32xf32>, vector<16x32xf32> -> vector<16x32xf32>
    %cst_3 = arith.constant 5.65685415 : f32
    %8 = vector.broadcast %cst_3 : f32 to vector<16x32xf32>
    %9 = arith.mulf %7, %8 : vector<16x32xf32>
    %c0_4 = arith.constant 0 : index
    %c0_5 = arith.constant 0 : index
    %10 = vector.load %arg3[%c0_4, %c0_5] : memref<16x32xf32, #tpu.memory_space<vmem>>, vector<16x32xf32>
    tpu.vector_store %arg3[%c0_4, %c0_5], %9 {strides = array<i32>} : memref<16x32xf32, #tpu.memory_space<vmem>>, vector<16x32xf32>,
    return
  }
  func.func @transform_0(%arg0: i32) -> (i32, i32) {
    %c0_i32 = arith.constant 0 : i32
    %c0_i32_0 = arith.constant 0 : i32
    return %arg0, %c0_i32 : i32, i32
  }
  func.func @transform_1(%arg0: i32) -> (i32, i32) {
    %c0_i32 = arith.constant 0 : i32
    %c0_i32_0 = arith.constant 0 : i32
    %c0_i32_1 = arith.constant 0 : i32
    return %c0_i32, %c0_i32_0 : i32, i32
  }
  func.func @transform_2(%arg0: i32) -> (i32, i32) {
    %c0_i32 = arith.constant 0 : i32
    %c0_i32_0 = arith.constant 0 : i32
    return %arg0, %c0_i32 : i32, i32
  }
}

</mosaic_0001>

<bundles_post_ra>
// kernel: tpu_custom_call.1
= control target key start
LH: loop header
LB: loop body
LE: loop exit
PB: predicated region body
PF: predicated region fallthrough
CT: control target
= control target key end

     0   :  { %s215_s0 = inlined_call_operand.vmem [shape: s32[16,1], index: 0, kind: input, shape index: {}]   ;;  %s216_s1 = inlined_call_operand.vmem [shape: f32[8,32], index: 1, kind: input, shape index: {}]   ;;  %s217_s2 = inlined_call_operand.hbm [shape: f32[16,32], index: 2, kind: output, shape index: {}]  }
   0x1   :  { %v14_v0 = vld [vmem:[%s215_s0] sm:$0xff] }
   0x2   :  { %7 = vsyncpa [#allocation3], 0  ;;  %v174_v1 = vmov 0   ;;  %v15_v2 = vld [vmem:[%s215_s0 + $0x8] sm:$0xff]  ;;  %v28_v3 = vld [vmem:[%s216_s1] sm:$0xff]  ;;  %v12_v4 = vlaneseq  ;;  %vm29_vm0 = vcmask 64512  }
   0x3   :  { %149 = vset.pattern.permute.xlu0 %v174_v1  ;;  %139 = vmatprep.subr.mxu0 %v28_v3  ;;  %v175_v7 = vmov 0.0   ;;  %s176_s0 = smov [#allocation2]   ;;  %vm113_vm3 = vcmask 261120  }
   0x4   :  { %17 = vperm.xlu0 %149, %v14_v0   ;;  %140 = vmatpush3.msra.mxu0 %v28_v3  ;;  %v13_v5 = vand.u32 127, %v12_v4  ;;  %s121_s15 = sshll.u32 %s176_s0, 4  ;;  %s122_s15 = int_to_ptr.vmem [resolvable:$true] %s121_s15 }
   0x5   :  { %s150_s1 = scalar_lea.vmem %s122_s15, 256  ;;  %p155_p1 = scmp.lt.s32.totalorder %s122_s15, %s122_s15 }
   0x6   :  { %p151_p0 = scmp.ne.s32.totalorder %s122_s15, %s150_s1  ;;  %p156_p2 = scmp.lt.s32.totalorder %s150_s1, %s150_s1 }
   0x8   :  { %20 = vperm.xlu0 %149, %v15_v2   ;;  %p157_p3 = por %p156_p2, %p155_p1 }
   0xa   :  { %p158_p4 = pnand %p157_p3, %p151_p0 }
  0x83   :  { %v18_v6 = vpop.permute.xlu0 %17 }
  0x84   :  { %vm22_vm1 = vcmp.eq.s32.totalorder %v13_v5, %v18_v6 }
  0x85   :  { %v132_v8 = vsel %vm22_vm1, 1.0, %v175_v7 }
  0x86   :  { %141 = vmatprep.mubr.msk.f32.mxu0 %vm29_vm0, %v132_v8 }
  0x87   :  { %v21_v9 = vpop.permute.xlu0 %20 }
  0x88   :  { %vm23_vm2 = vcmp.eq.s32.totalorder %v13_v5, %v21_v9 }
  0x89   :  { %v133_v10 = vsel %vm23_vm2, 1.0, %v175_v7 }
  0x8a   :  { %142 = vmatmul.mubr.msk.f32.vlgmr.msra.gmra.mrb[0].mxu0 %vm29_vm0, %v133_v10 }
 0x15d   :  { %v143_v11 = vpop.f32.mrb[0].mxu0 }
 0x15e   :  { %v112_v12 = vmul.f32 5.656854, %v143_v11  ;;  %v102_v13 = vpop.f32.mrb[1].mxu0 }
 0x15f   :  { %v111_v14 = vmul.f32 5.656854, %v102_v13 }
 0x160   :  { %115 = vst.msk [vmem:[#allocation2 + $0x8] sm:$0xff] %vm113_vm3, %v112_v12 }
 0x161   :  { %114 = vst.msk [vmem:[#allocation2] sm:$0xff] %vm113_vm3, %v111_v14 }
 0x162   :  { %161 = shalt.err (!%p158_p4)
}
 0x163   :  { %s162_s18 = scalar_lea.hbm %s217_s2, 256 }
 0x164   :  { %p163_p5 = scmp.ne.s32.totalorder %s217_s2, %s162_s18  ;;  %p166_p6 = scmp.lt.u32.totalorder %s162_s18, %s217_s2 }
 0x166   :  { %p168_p7 = pnand %p166_p6, %p163_p5 }
 0x168   :  { %171 = shalt.err (!%p168_p7)
}
 0x169   :  { %s177_s23 = smov 128   ;;  %s178_s24 = smov 8  }
 0x16a   :  { %127 = dma.vmem_to_hbm [thread:$0]  %s122_s15, 256, %s217_s2, [#allocation3], %s177_s23, %s177_s23, %s178_s24  }
 0x16b   :  { %172 = dma.done.wait [#allocation3], 256  }
 0x16c   :  { %173 = vsyncadd [#allocation3], 4294967040 }
 0x16d   :  { %131 = vsyncpa [#allocation3], 1 }

</bundles_post_ra>
